<compile_context>
chip_gen: v6e
topology: v6e:2x2x1
jax: 0.10.0
libtpu: 0.0.40
codegen_flags: <defaults>
</compile_context>

<pallas_src>
import jax
import jax.numpy as jnp
from jax.experimental import pallas as pl
from jax.experimental.pallas import tpu as pltpu


def _vmem_capacity_bytes():
    """Physical VMEM per core, with a conservative fallback (e.g. interpret mode)."""
    try:
        return int(pltpu.get_tpu_info().vmem_capacity_bytes)
    except Exception:
        return 64 * 1024 * 1024  # v7x-sized fallback is safe on every generation


def _round_down_multiple(x, m):
    return max(m, (x // m) * m)


# ----------------------------------------------------------------------------
# Cross-entropy: sum of per-token NLL and valid-token count, accumulated over
# a (partials, row-tiles) grid.  ignore_index = -100 rows and out-of-range
# (padding) rows are masked with a single select, so no padded copy of the
# logits is ever materialized in HBM.
# ----------------------------------------------------------------------------
def _cross_entropy_mean(logits, labels, *, num_partials=2):
    """Mean CE over tokens whose label != -100 (PyTorch F.cross_entropy semantics)."""
    N, V = logits.shape
    itemsize = jnp.dtype(logits.dtype).itemsize

    vmem_cap = _vmem_capacity_bytes()
    vmem_limit = min((vmem_cap * 3) // 4, 100 * 1024 * 1024)

    # Size the row tile so the double-buffered logits block uses ~1/3 of the
    # scoped-VMEM budget (leaves room for labels, accumulators, headroom).
    max_rows = _round_down_multiple(vmem_limit // (3 * 2 * V * itemsize), 8)
    max_rows = min(max_rows, 1024)
    tile_rows = N if max_rows >= N else max_rows

    n_tiles = pl.cdiv(N, tile_rows)
    # Per-partial accumulators: lets the outer grid axis be "parallel" so the
    # two TensorCores of a v7x chip each reduce half the row tiles.
    num_partials = max(1, min(num_partials, n_tiles))
    n_inner = pl.cdiv(n_tiles, num_partials)

    def kernel(logits_ref, labels_ref, sum_ref, cnt_ref):
        p = pl.program_id(0)
        i = pl.program_id(1)

        @pl.when(i == 0)
        def _():
            sum_ref[...] = jnp.zeros_like(sum_ref)
            cnt_ref[...] = jnp.zeros_like(cnt_ref)

        x = logits_ref[...].astype(jnp.float32)          # (TR, V)
        lbl = labels_ref[...]                            # (TR, 1) int32

        # Global row index of every row in this tile (rows >= N are padding).
        tile_idx = p * n_inner + i
        row = tile_rows * tile_idx + jax.lax.broadcasted_iota(
            jnp.int32, (tile_rows, 1), 0)
        in_range = row < N                               # (TR, 1) bool

        # Numerically stable logsumexp along vocab.
        m = jnp.max(x, axis=-1, keepdims=True)
        lse = m + jnp.log(jnp.sum(jnp.exp(x - m), axis=-1, keepdims=True))

        # Gather the label logit with a single select per element.
        col = jax.lax.broadcasted_iota(jnp.int32, x.shape, 1)
        label_logit = jnp.sum(jnp.where(col == lbl, x, 0.0),
                              axis=-1, keepdims=True)

        valid = jnp.logical_and(in_range, lbl != -100)   # (TR, 1)
        # where-guard: masked / garbage rows contribute exactly 0 even if
        # their lse is inf/nan.
        loss = jnp.where(valid, lse - label_logit, 0.0)

        sum_ref[...] += jnp.sum(loss)
        cnt_ref[...] += jnp.sum(valid.astype(jnp.float32))

    # Tiles past the end (when num_partials does not divide n_tiles) are
    # clamped to the last valid block; their rows are masked out in-kernel.
    def in_map(p, i):
        return (jnp.minimum(p * n_inner + i, n_tiles - 1), 0)

    cost = pl.CostEstimate(
        flops=int(6 * N * V),
        transcendentals=int(N * V),
        bytes_accessed=int(N * V * itemsize + N * 4 + 8 * num_partials),
    )

    sums, cnts = pl.pallas_call(
        kernel,
        out_shape=(jax.ShapeDtypeStruct((num_partials, 1, 1), jnp.float32),
                   jax.ShapeDtypeStruct((num_partials, 1, 1), jnp.float32)),
        grid_spec=pltpu.PrefetchScalarGridSpec(
            num_scalar_prefetch=0,
            grid=(num_partials, n_inner),
            in_specs=[
                pl.BlockSpec((tile_rows, V), in_map),
                pl.BlockSpec((tile_rows, 1), in_map),
            ],
            out_specs=[
                pl.BlockSpec((1, 1, 1), lambda p, i: (p, 0, 0)),
                pl.BlockSpec((1, 1, 1), lambda p, i: (p, 0, 0)),
            ],
        ),
        compiler_params=pltpu.CompilerParams(
            dimension_semantics=("parallel", "arbitrary"),
            vmem_limit_bytes=vmem_limit),
        cost_estimate=cost,
    )(logits, labels)

    # TODO(synk): for very large vocabularies (>=64k) add a vocab grid axis
    # with online-softmax accumulation instead of a full-V row tile.
    return jnp.sum(sums) / jnp.sum(cnts)


# ----------------------------------------------------------------------------
# MSE: row-tiled accumulation of the sum of squared differences.
# ----------------------------------------------------------------------------
def _mse_mean(a, b):
    """mean((a - b)**2) over a 2-D (M, D) view."""
    M, D = a.shape
    itemsize = max(jnp.dtype(a.dtype).itemsize, jnp.dtype(b.dtype).itemsize)

    vmem_cap = _vmem_capacity_bytes()
    vmem_limit = min((vmem_cap * 3) // 4, 100 * 1024 * 1024)

    # Two inputs, each double-buffered -> 4 live tiles of (tile_m, D).
    max_rows = _round_down_multiple(vmem_limit // (3 * 4 * D * itemsize), 8)
    max_rows = min(max_rows, 2048)
    tile_m = M if max_rows >= M else max_rows
    n_tiles = pl.cdiv(M, tile_m)

    def kernel(a_ref, b_ref, out_ref):
        i = pl.program_id(0)

        @pl.when(i == 0)
        def _():
            out_ref[...] = jnp.zeros_like(out_ref)

        d = a_ref[...].astype(jnp.float32) - b_ref[...].astype(jnp.float32)
        row = tile_m * i + jax.lax.broadcasted_iota(jnp.int32, (tile_m, 1), 0)
        d = jnp.where(row < M, d, 0.0)                   # mask partial last tile
        out_ref[...] += jnp.sum(d * d)

    cost = pl.CostEstimate(
        flops=int(3 * M * D),
        transcendentals=0,
        bytes_accessed=int(2 * M * D * itemsize + 4),
    )

    sq_sum = pl.pallas_call(
        kernel,
        out_shape=jax.ShapeDtypeStruct((1, 1), jnp.float32),
        grid_spec=pltpu.PrefetchScalarGridSpec(
            num_scalar_prefetch=0,
            grid=(n_tiles,),
            in_specs=[pl.BlockSpec((tile_m, D), lambda i: (i, 0)),
                      pl.BlockSpec((tile_m, D), lambda i: (i, 0))],
            out_specs=pl.BlockSpec((1, 1), lambda i: (0, 0)),
        ),
        compiler_params=pltpu.CompilerParams(
            dimension_semantics=("arbitrary",),
            vmem_limit_bytes=vmem_limit),
        cost_estimate=cost,
    )(a, b)
    return sq_sum[0, 0] / jnp.float32(M * D)


# ----------------------------------------------------------------------------
# Module-equivalent wrapper
# ----------------------------------------------------------------------------
def memory_aware_loss(outputs, labels, memory_state=None, prev_memory=None,
                      alpha=0.1):
    V = outputs.shape[-1]
    logits = outputs.reshape(-1, V)                 # keep native dtype; cast in-kernel
    lbls = labels.reshape(-1, 1).astype(jnp.int32)

    task_loss = _cross_entropy_mean(logits, lbls)

    memory_loss = jnp.float32(0.0)
    if memory_state is not None and prev_memory is not None:
        ms = memory_state.reshape(memory_state.shape[0], -1)
        pm = prev_memory.reshape(prev_memory.shape[0], -1)
        memory_loss = _mse_mean(ms, pm)

    return task_loss + jnp.float32(alpha) * memory_loss


if __name__ == "__main__":
    key = jax.random.PRNGKey(0)
    k1, k2, k3, k4 = jax.random.split(key, 4)

    batch, seq, vocab, hidden = 2, 8, 32, 32

    outputs = jax.random.normal(k1, (batch, seq, vocab), dtype=jnp.float32)
    labels = jax.random.randint(k2, (batch, seq), 0, vocab, dtype=jnp.int32)
    # put a couple of ignore_index tokens in to exercise the mask path
    labels = labels.at[0, 0].set(-100).at[1, 3].set(-100)

    memory_state = jax.random.normal(k3, (batch, hidden), dtype=jnp.float32)
    prev_memory = jax.random.normal(k4, (batch, hidden), dtype=jnp.float32)

    loss = memory_aware_loss(outputs, labels, memory_state, prev_memory,
                             alpha=0.1)
    jax.block_until_ready(loss)

    # reference check in plain JAX
    logits = outputs.reshape(-1, vocab)
    lbl = labels.reshape(-1)
    valid = lbl != -100
    lse = jax.nn.logsumexp(logits, axis=-1)
    gathered = jnp.take_along_axis(
        logits, jnp.clip(lbl, 0, vocab - 1)[:, None], axis=-1)[:, 0]
    ce_ref = jnp.sum((lse - gathered) * valid) / jnp.sum(valid)
    mse_ref = jnp.mean((memory_state - prev_memory) ** 2)
    ref = ce_ref + 0.1 * mse_ref
    assert jnp.allclose(loss, ref, rtol=1e-5, atol=1e-5), (loss, ref)

    print("KERNEL_OK")
</pallas_src>

<mosaic_0001>
module attributes {stable_mosaic.version = 11 : i64} {
  func.func @kernel(%arg0: i32, %arg1: i32, %arg2: memref<16x32xf32, #tpu.memory_space<vmem>>, %arg3: memref<16x1xi32, #tpu.memory_space<vmem>>, %arg4: memref<1x1x1xf32, #tpu.memory_space<vmem>>, %arg5: memref<1x1x1xf32, #tpu.memory_space<vmem>>) attributes {dimension_semantics = [#tpu.dimension_semantics<parallel>, #tpu.dimension_semantics<arbitrary>], iteration_bounds = array<i64: 1, 1>, scalar_prefetch = 0 : i64, scratch_operands = 0 : i64, tpu.core_type = #tpu.core_type<tc>, window_params = [{transform_indices = @transform_0, window_bounds = array<i64: 16, 32>}, {transform_indices = @transform_1, window_bounds = array<i64: 16, 1>}, {transform_indices = @transform_2, window_bounds = array<i64: 1, 1, 1>}, {transform_indices = @transform_3, window_bounds = array<i64: 1, 1, 1>}]} {
    %c0_i32 = arith.constant 0 : i32
    %0 = arith.cmpi eq, %arg1, %c0_i32 : i32
    %1 = arith.extui %0 : i1 to i32
    %c0_i32_0 = arith.constant 0 : i32
    %2 = arith.cmpi ne, %1, %c0_i32_0 : i32
    scf.if %2 {
      %cst_23 = arith.constant 0.000000e+00 : f32
      %53 = vector.broadcast %cst_23 : f32 to vector<1x1x1xf32>
      %c0_24 = arith.constant 0 : index
      %c0_25 = arith.constant 0 : index
      %c0_26 = arith.constant 0 : index
      %54 = vector.load %arg4[%c0_24, %c0_25, %c0_26] : memref<1x1x1xf32, #tpu.memory_space<vmem>>, vector<1x1x1xf32>
      tpu.vector_store %arg4[%c0_24, %c0_25, %c0_26], %53 {strides = array<i32>} : memref<1x1x1xf32, #tpu.memory_space<vmem>>, vector<1x1x1xf32>,
      %cst_27 = arith.constant 0.000000e+00 : f32
      %55 = vector.broadcast %cst_27 : f32 to vector<1x1x1xf32>
      %c0_28 = arith.constant 0 : index
      %c0_29 = arith.constant 0 : index
      %c0_30 = arith.constant 0 : index
      %56 = vector.load %arg5[%c0_28, %c0_29, %c0_30] : memref<1x1x1xf32, #tpu.memory_space<vmem>>, vector<1x1x1xf32>
      tpu.vector_store %arg5[%c0_28, %c0_29, %c0_30], %55 {strides = array<i32>} : memref<1x1x1xf32, #tpu.memory_space<vmem>>, vector<1x1x1xf32>,
    } else {
    }
    %c0 = arith.constant 0 : index
    %c0_1 = arith.constant 0 : index
    %3 = vector.load %arg2[%c0, %c0_1] : memref<16x32xf32, #tpu.memory_space<vmem>>, vector<16x32xf32>
    %c0_2 = arith.constant 0 : index
    %c0_3 = arith.constant 0 : index
    %4 = vector.load %arg3[%c0_2, %c0_3] : memref<16x1xi32, #tpu.memory_space<vmem>>, vector<16x1xi32>
    %c1_i32 = arith.constant 1 : i32
    %5 = arith.muli %arg0, %c1_i32 : i32
    %6 = arith.addi %5, %arg1 : i32
    %c16_i32 = arith.constant 16 : i32
    %7 = arith.muli %c16_i32, %6 : i32
    %8 = tpu.iota {dimensions = array<i32: 0>} : vector<16x1xi32>
    %9 = vector.broadcast %7 : i32 to vector<16x1xi32>
    %10 = arith.addi %9, %8 : vector<16x1xi32>
    %c16_i32_4 = arith.constant 16 : i32
    %11 = vector.broadcast %c16_i32_4 : i32 to vector<16x1xi32>
    %12 = arith.cmpi slt, %10, %11 : vector<16x1xi32>
    %cst = arith.constant dense<0xFF800000> : vector<16xf32>
    %13 = vector.multi_reduction <maximumf>, %3, %cst [1] : vector<16x32xf32> to vector<16xf32>
    %14 = vector.shape_cast %13 : vector<16xf32> to vector<16x1xf32>
    %15 = vector.broadcast %14 : vector<16x1xf32> to vector<16x32xf32>
    %16 = arith.subf %3, %15 : vector<16x32xf32>
    %17 = math.exp %16 : vector<16x32xf32>
    %cst_5 = arith.constant dense<0.000000e+00> : vector<16xf32>
    %18 = vector.multi_reduction <add>, %17, %cst_5 [1] : vector<16x32xf32> to vector<16xf32>
    %19 = vector.shape_cast %18 : vector<16xf32> to vector<16x1xf32>
    %20 = math.log %19 : vector<16x1xf32>
    %21 = arith.addf %14, %20 : vector<16x1xf32>
    %22 = tpu.iota {dimensions = array<i32: 1>} : vector<16x32xi32>
    %23 = vector.broadcast %4 : vector<16x1xi32> to vector<16x32xi32>
    %24 = arith.cmpi eq, %22, %23 : vector<16x32xi32>
    %cst_6 = arith.constant 0.000000e+00 : f32
    %25 = vector.broadcast %cst_6 : f32 to vector<16x32xf32>
    %26 = arith.select %24, %3, %25 : vector<16x32xi1>, vector<16x32xf32>
    %cst_7 = arith.constant dense<0.000000e+00> : vector<16xf32>
    %27 = vector.multi_reduction <add>, %26, %cst_7 [1] : vector<16x32xf32> to vector<16xf32>
    %28 = vector.shape_cast %27 : vector<16xf32> to vector<16x1xf32>
    %c-100_i32 = arith.constant -100 : i32
    %29 = vector.broadcast %c-100_i32 : i32 to vector<16x1xi32>
    %30 = arith.cmpi ne, %4, %29 : vector<16x1xi32>
    %31 = arith.andi %12, %30 : vector<16x1xi1>
    %32 = arith.subf %21, %28 : vector<16x1xf32>
    %cst_8 = arith.constant 0.000000e+00 : f32
    %33 = vector.broadcast %cst_8 : f32 to vector<16x1xf32>
    %34 = arith.select %31, %32, %33 : vector<16x1xi1>, vector<16x1xf32>
    %c0_9 = arith.constant 0 : index
    %c0_10 = arith.constant 0 : index
    %c0_11 = arith.constant 0 : index
    %35 = vector.load %arg4[%c0_9, %c0_10, %c0_11] : memref<1x1x1xf32, #tpu.memory_space<vmem>>, vector<1x1x1xf32>
    %36 = vector.shape_cast %34 : vector<16x1xf32> to vector<1x16x1xf32>
    %cst_12 = arith.constant dense<0.000000e+00> : vector<1xf32>
    %37 = vector.multi_reduction <add>, %36, %cst_12 [1, 2] : vector<1x16x1xf32> to vector<1xf32>
    %38 = vector.shape_cast %37 : vector<1xf32> to vector<1x1x1xf32>
    %39 = vector.extract %38[0, 0, 0] : f32 from vector<1x1x1xf32>
    %40 = vector.broadcast %39 : f32 to vector<1x1x1xf32>
    %41 = arith.addf %35, %40 : vector<1x1x1xf32>
    %c0_13 = arith.constant 0 : index
    %c0_14 = arith.constant 0 : index
    %c0_15 = arith.constant 0 : index
    %42 = vector.load %arg4[%c0_13, %c0_14, %c0_15] : memref<1x1x1xf32, #tpu.memory_space<vmem>>, vector<1x1x1xf32>
    tpu.vector_store %arg4[%c0_13, %c0_14, %c0_15], %41 {strides = array<i32>} : memref<1x1x1xf32, #tpu.memory_space<vmem>>, vector<1x1x1xf32>,
    %c0_16 = arith.constant 0 : index
    %c0_17 = arith.constant 0 : index
    %c0_18 = arith.constant 0 : index
    %43 = vector.load %arg5[%c0_16, %c0_17, %c0_18] : memref<1x1x1xf32, #tpu.memory_space<vmem>>, vector<1x1x1xf32>
    %44 = arith.extui %31 : vector<16x1xi1> to vector<16x1xi32>
    %45 = arith.sitofp %44 : vector<16x1xi32> to vector<16x1xf32>
    %46 = vector.shape_cast %45 : vector<16x1xf32> to vector<1x16x1xf32>
    %cst_19 = arith.constant dense<0.000000e+00> : vector<1xf32>
    %47 = vector.multi_reduction <add>, %46, %cst_19 [1, 2] : vector<1x16x1xf32> to vector<1xf32>
    %48 = vector.shape_cast %47 : vector<1xf32> to vector<1x1x1xf32>
    %49 = vector.extract %48[0, 0, 0] : f32 from vector<1x1x1xf32>
    %50 = vector.broadcast %49 : f32 to vector<1x1x1xf32>
    %51 = arith.addf %43, %50 : vector<1x1x1xf32>
    %c0_20 = arith.constant 0 : index
    %c0_21 = arith.constant 0 : index
    %c0_22 = arith.constant 0 : index
    %52 = vector.load %arg5[%c0_20, %c0_21, %c0_22] : memref<1x1x1xf32, #tpu.memory_space<vmem>>, vector<1x1x1xf32>
    tpu.vector_store %arg5[%c0_20, %c0_21, %c0_22], %51 {strides = array<i32>} : memref<1x1x1xf32, #tpu.memory_space<vmem>>, vector<1x1x1xf32>,
    return
  }
  func.func @transform_0(%arg0: i32, %arg1: i32) -> (i32, i32) {
    %c1_i32 = arith.constant 1 : i32
    %0 = arith.muli %arg0, %c1_i32 : i32
    %1 = arith.addi %0, %arg1 : i32
    %c0_i32 = arith.constant 0 : i32
    %2 = arith.minsi %1, %c0_i32 : i32
    %c0_i32_0 = arith.constant 0 : i32
    %c0_i32_1 = arith.constant 0 : i32
    return %2, %c0_i32_0 : i32, i32
  }
  func.func @transform_1(%arg0: i32, %arg1: i32) -> (i32, i32) {
    %c1_i32 = arith.constant 1 : i32
    %0 = arith.muli %arg0, %c1_i32 : i32
    %1 = arith.addi %0, %arg1 : i32
    %c0_i32 = arith.constant 0 : i32
    %2 = arith.minsi %1, %c0_i32 : i32
    %c0_i32_0 = arith.constant 0 : i32
    %c0_i32_1 = arith.constant 0 : i32
    return %2, %c0_i32_0 : i32, i32
  }
  func.func @transform_2(%arg0: i32, %arg1: i32) -> (i32, i32, i32) {
    %c0_i32 = arith.constant 0 : i32
    %c0_i32_0 = arith.constant 0 : i32
    %c0_i32_1 = arith.constant 0 : i32
    return %arg0, %c0_i32, %c0_i32_0 : i32, i32, i32
  }
  func.func @transform_3(%arg0: i32, %arg1: i32) -> (i32, i32, i32) {
    %c0_i32 = arith.constant 0 : i32
    %c0_i32_0 = arith.constant 0 : i32
    %c0_i32_1 = arith.constant 0 : i32
    return %arg0, %c0_i32, %c0_i32_0 : i32, i32, i32
  }
}

</mosaic_0001>

<bundles_post_ra>
// kernel: tpu_custom_call.1
= control target key start
LH: loop header
LB: loop body
LE: loop exit
PB: predicated region body
PF: predicated region fallthrough
CT: control target
= control target key end

     0   :  { %9 = vsyncpa [#allocation3], 0  ;;  %vm100_vm0 = vcmask 261120   ;;  %v293_v4 = vmov 0   ;;  %s353_s0 = inlined_call_operand.vmem [shape: f32[16,32], index: 0, kind: input, shape index: {}]   ;;  %s354_s1 = inlined_call_operand.vmem [shape: s32[16,1], index: 1, kind: input, shape index: {}]   ;;  %s355_s2 = inlined_call_operand.hbm [shape: f32[1,1,1], index: 2, kind: output, shape index: {0}]   ;;  %s356_s3 = inlined_call_operand.hbm [shape: f32[1,1,1], index: 3, kind: output, shape index: {1}]  }
   0x1   :  { %v86_v0 = vld [vmem:[%s353_s0] sm:$0xff]  ;;  %v87_v1 = vld [vmem:[%s353_s0 + $0x8] sm:$0xff]  ;;  %239 = vset.pattern.permute.xlu1 %v293_v4  ;;  %240 = vset.pattern.permute.xlu0 %v293_v4 }
   0x2   :  { %v88_v2 = vld [vmem:[%s354_s1] sm:$0xff]  ;;  %v101_v3 = vsel %vm100_vm0, %v86_v0, -inf }
   0x3   :  { %10 = vsyncpa [#allocation5], 0  ;;  %102 = vmax.xlane.f32.xlu0 %v101_v3  ;;  %128 = vperm.xlu1 %239, %v88_v2   ;;  %v104_v5 = vsel %vm100_vm0, %v87_v1, -inf  ;;  %v89_v6 = vld [vmem:[%s354_s1 + $0x8] sm:$0xff]  ;;  %v125_v13 = vlaneseq  ;;  %vm143_vm3 = vcmp.ne.s32.totalorder %v88_v2, 4294967196  ;;  %v294_v25 = vmov 0.0  }
   0x4   :  { %v229_v26 = vsel %vm143_vm3, 1.0, %v294_v25  ;;  %vm144_vm4 = vcmp.ne.s32.totalorder %v89_v6, 4294967196  ;;  %vm152_vm5 = vcmask 7168   ;;  %vm83_vm6 = vcmask 0   ;;  %s295_s0 = smov [#allocation2]   ;;  %s296_s21 = smov [#allocation4]  }
   0x5   :  { %v126_v15 = vand.u32 127, %v125_v13  ;;  %v230_v27 = vsel %vm144_vm4, 1.0, %v294_v25  ;;  %v174_v28 = vsel %vm152_vm5, %v229_v26, 0.0  ;;  %84 = vst.msk [vmem:[#allocation2] sm:$0x1] %vm83_vm6, %v294_v25  ;;  %s195_s1 = sshll.u32 %s295_s0, 4  ;;  %s196_s1 = int_to_ptr.vmem [resolvable:$true] %s195_s1 }
   0x6   :  { %v175_v29 = vsel %vm152_vm5, %v230_v27, 0.0  ;;  %85 = vst.msk [vmem:[#allocation4] sm:$0x1] %vm83_vm6, %v294_v25  ;;  %s205_s22 = sshll.u32 %s296_s21, 4  ;;  %s249_s24 = scalar_lea.vmem %s196_s1, 16  ;;  %s206_s22 = int_to_ptr.vmem [resolvable:$true] %s205_s22 }
   0x7   :  { %105 = vmax.xlane.f32.xlu0 %v104_v5  ;;  %131 = vperm.xlu1 %239, %v89_v6   ;;  %v176_v30 = vadd.f32 %v175_v29, %v174_v28  ;;  %p250_p0 = scmp.ne.s32.totalorder %s196_s1, %s249_s24  ;;  %s253_s25 = scalar_lea.vmem %s196_s1, 32 }
   0x8   :  { %p254_p1 = scmp.lt.s32.totalorder %s196_s1, %s196_s1  ;;  %p255_p2 = scmp.lt.s32.totalorder %s253_s25, %s249_s24 }
   0xa   :  { %p256_p3 = por %p255_p2, %p254_p1 }
   0xc   :  { %v151_v62 = vld [vmem:[#allocation2] sm:$0x1]  ;;  %p257_p4 = pnand %p256_p3, %p250_p0 }
  0x7e   :  { %v129_v14 = vpop.permute.xlu1 %128 }
  0x7f   :  { %vm133_vm1 = vcmp.eq.s32.totalorder %v126_v15, %v129_v14 }
  0x80   :  { %v135_v18 = vsel %vm133_vm1, %v86_v0, 0.0 }
  0x81   :  { %v137_v20 = vsel %vm100_vm0, %v135_v18, 0.0 }
  0x82   :  { %v132_v16 = vpop.permute.xlu1 %131 }
  0x83   :  { %vm134_vm2 = vcmp.eq.s32.totalorder %v126_v15, %v132_v16 }
  0x84   :  { %v136_v22 = vsel %vm134_vm2, %v87_v1, 0.0 }
  0x85   :  { %v140_v24 = vsel %vm100_vm0, %v136_v22, 0.0 }
  0x8c   :  { %v103_v7 = vpop.xlane.xlu0 %102 }
  0x8d   :  { %v107_v8 = vsub.f32 %v86_v0, %v103_v7 }
  0x8f   :  { %v109_v9 = vmul.f32 1.442695, %v107_v8 }
  0x90   :  { %v106_v10 = vpop.xlane.xlu0 %105 }
  0x91   :  { %241 = vpow2.f32 %v109_v9  ;;  %v108_v11 = vsub.f32 %v87_v1, %v106_v10  ;;  %v169_v1 = vld [vmem:[#allocation4] sm:$0x1] }
  0x93   :  { %v111_v12 = vmul.f32 1.442695, %v108_v11 }
  0x95   :  { %243 = vpow2.f32 %v111_v12 }
  0x9e   :  { %v242_v17 = vpop.eup %241 }
  0x9f   :  { %v113_v19 = vsel %vm100_vm0, %v242_v17, 0.0 }
  0xa0   :  { %114 = vadd.xlane.f32.xlu0 %v113_v19 }
  0xa2   :  { %v244_v21 = vpop.eup %243 }
  0xa3   :  { %v116_v23 = vsel %vm100_vm0, %v244_v21, 0.0 }
  0xa4   :  { %117 = vadd.xlane.f32.xlu1 %v116_v23  ;;  %138 = vadd.xlane.f32.xlu0 %v137_v20 }
  0xa8   :  { %141 = vadd.xlane.f32.xlu0 %v140_v24 }
 0x129   :  { %v115_v31 = vpop.xlane.xlu0 %114 }
 0x12a   :  { %245 = vlog2.f32 %v115_v31 }
 0x12d   :  { %v118_v32 = vpop.xlane.xlu1 %117  ;;  %v139_v35 = vpop.xlane.xlu0 %138 }
 0x12e   :  { %247 = vlog2.f32 %v118_v32 }
 0x131   :  { %v142_v41 = vpop.xlane.xlu0 %141 }
 0x137   :  { %v246_v33 = vpop.eup %245 }
 0x138   :  { %v120_v34 = vmul.f32 0.6931472, %v246_v33 }
 0x13a   :  { %v123_v36 = vadd.f32 %v120_v34, %v103_v7 }
 0x13b   :  { %v248_v37 = vpop.eup %247 }
 0x13c   :  { %v122_v38 = vmul.f32 0.6931472, %v248_v37  ;;  %v147_v39 = vsub.f32 %v123_v36, %v139_v35 }
 0x13e   :  { %v124_v40 = vadd.f32 %v122_v38, %v106_v10  ;;  %v149_v42 = vsel %vm143_vm3, %v147_v39, 0.0 }
 0x13f   :  { %v153_v45 = vsel %vm152_vm5, %v149_v42, 0.0 }
 0x140   :  { %v148_v43 = vsub.f32 %v124_v40, %v142_v41 }
 0x142   :  { %v150_v44 = vsel %vm144_vm4, %v148_v43, 0.0 }
 0x143   :  { %v154_v46 = vsel %vm152_vm5, %v150_v44, 0.0 }
 0x144   :  { %v155_v47 = vadd.f32 %v154_v46, %v153_v45 }
 0x146   :  { %156 = vadd.xlane.f32.xlu0 %v155_v47 }
 0x14a   :  { %177 = vadd.xlane.f32.xlu0 %v176_v30 }
 0x1cf   :  { %v157_v48 = vpop.xlane.xlu0 %156 }
 0x1d0   :  { %v158_v49 = vrot.slane %v157_v48, 4 }
 0x1d2   :  { %v159_v50 = vadd.f32 %v158_v49, %v157_v48 }
 0x1d3   :  { %v178_v51 = vpop.xlane.xlu0 %177 }
 0x1d4   :  { %v160_v52 = vrot.slane %v159_v50, 2  ;;  %v179_v53 = vrot.slane %v178_v51, 4 }
 0x1d6   :  { %v180_v54 = vadd.f32 %v179_v53, %v178_v51  ;;  %v161_v55 = vadd.f32 %v160_v52, %v159_v50 }
 0x1d8   :  { %v181_v56 = vrot.slane %v180_v54, 2  ;;  %v162_v57 = vrot.slane %v161_v55, 1 }
 0x1da   :  { %v182_v58 = vadd.f32 %v181_v56, %v180_v54  ;;  %v163_v59 = vadd.f32 %v162_v57, %v161_v55 }
 0x1dc   :  { %231 = vpush %v163_v59  ;;  %v183_v60 = vrot.slane %v182_v58, 1 }
 0x1de   :  { %v184_v61 = vadd.f32 %v183_v60, %v182_v58 }
 0x1e0   :  { %233 = vpush %v184_v61 }
 0x20d   :  { %s232_s20 = spop %231 }
 0x20e   :  { %v165_v63 = vstv %s232_s20 }
 0x20f   :  { %v166_v0 = vadd.f32 %v165_v63, %v151_v62 }
 0x211   :  { %168 = vst.msk [vmem:[#allocation2] sm:$0x1] %vm83_vm6, %v166_v0  ;;  %s234_s23 = spop %233 }
 0x212   :  { %v186_v2 = vstv %s234_s23 }
 0x213   :  { %260 = shalt.err (!%p257_p4)
}
 0x214   :  { %198 = dma.vmem_to_hbm [thread:$0]  %s196_s1, 16, %s355_s2, [#allocation3]   ;;  %v187_v3 = vadd.f32 %v186_v2, %v169_v1 }
 0x215   :  { %s269_s28 = scalar_lea.vmem %s206_s22, 16  ;;  %s273_s29 = scalar_lea.vmem %s206_s22, 32 }
 0x216   :  { %188 = vst.msk [vmem:[#allocation4] sm:$0x1] %vm83_vm6, %v187_v3  ;;  %p270_p5 = scmp.ne.s32.totalorder %s206_s22, %s269_s28  ;;  %p274_p6 = scmp.lt.s32.totalorder %s206_s22, %s206_s22 }
 0x217   :  { %p275_p7 = scmp.lt.s32.totalorder %s273_s29, %s269_s28 }
 0x219   :  { %p276_p8 = por %p275_p7, %p274_p6 }
 0x21b   :  { %p277_p9 = pnand %p276_p8, %p270_p5 }
 0x21d   :  { %280 = shalt.err (!%p277_p9)
}
 0x21e   :  { %208 = dma.vmem_to_hbm [thread:$0]  %s206_s22, 16, %s356_s3, [#allocation5]  }
 0x21f   :  { %289 = dma.done.wait [#allocation3], 16  }
 0x220   :  { %290 = vsyncadd [#allocation3], 4294967280 }
 0x221   :  { %291 = dma.done.wait [#allocation5], 16  }
 0x222   :  { %292 = vsyncadd [#allocation5], 4294967280 }
 0x223   :  { %215 = vsyncpa [#allocation3], 1 }
 0x224   :  { %216 = vsyncpa [#allocation5], 1 }

</bundles_post_ra>
